<compile_context>
chip_gen: v6e
topology: v6e:2x2x1
jax: 0.10.0
libtpu: 0.0.40
codegen_flags: <defaults>
</compile_context>

<pallas_src>
import math
from functools import partial

import jax
import jax.numpy as jnp
from jax import lax
from jax.experimental import pallas as pl
from jax.experimental.pallas import tpu as pltpu

# ---- model hyper-parameters (small, consistent with the module) ------------
N_HEADS = 4
DIM = 32
HEAD_DIM = DIM // N_HEADS
BATCH = 2
SEQ = 8


def _mha_kernel(x_ref, wq_ref, wk_ref, wv_ref, bq_ref, bk_ref, bv_ref,
                wo_ref, bo_ref, o_ref, *, bpb, L, H, hd, D, approx_recip):
    """MHA forward for one block of `bpb` batches.

    x_ref        : (bpb*L, D)  tokens (matmul dtype: f32 or bf16)
    wq/wk/wv_ref : (D, D)      in-projection weights, pre-transposed
                               (scale folded into wq)
    bq/bk/bv_ref : (1, D)      in-projection biases, f32 (scale folded into bq)
    wo_ref       : (D, D)      out-projection weight, pre-transposed
    bo_ref       : (1, D)      out-projection bias, f32
    o_ref        : (bpb*L, D)
    """
    x = x_ref[...]

    # Lane-dense in-projections: one (rows, D) @ (D, D) matmul per Q/K/V,
    # f32 accumulation on the MXU; bias add is a single broadcast each.
    q = jnp.dot(x, wq_ref[...], preferred_element_type=jnp.float32) + bq_ref[...]
    k = jnp.dot(x, wk_ref[...], preferred_element_type=jnp.float32) + bk_ref[...]
    v = jnp.dot(x, wv_ref[...], preferred_element_type=jnp.float32) + bv_ref[...]

    wo = wo_ref[...]
    bo = bo_ref[...]

    for b in range(bpb):                       # batch-outer (static, tiny)
        lo = b * L
        qb = q[lo:lo + L, :]                   # (L, D), sublane-aligned rows
        kb = k[lo:lo + L, :]
        vb = v[lo:lo + L, :]

        head_out = []
        for h in range(H):                     # head-inner (static)
            c = h * hd
            qh = qb[:, c:c + hd]               # lane slice (free at hd=128)
            kh = kb[:, c:c + hd]
            vh = vb[:, c:c + hd]

            # s = qh @ kh.T : contract last dims, no explicit transpose op.
            s = lax.dot_general(qh, kh, (((1,), (1,)), ((), ())),
                                preferred_element_type=jnp.float32)      # (L, L)
            s = s - jnp.max(s, axis=-1, keepdims=True)
            p = jnp.exp(s)                                               # f32 softmax
            inv = pl.reciprocal(jnp.sum(p, axis=-1, keepdims=True),
                                approx=approx_recip)                     # EUP slot
            head_out.append(
                jnp.dot(p, vh, preferred_element_type=jnp.float32) * inv)  # (L, hd)

        # Lane concat of heads -> single full-K (L, D) @ (D, D) out-projection.
        o_b = jnp.concatenate(head_out, axis=-1)                         # (L, D)
        out_b = jnp.dot(o_b.astype(wo.dtype), wo,
                        preferred_element_type=jnp.float32) + bo
        o_ref[lo:lo + L, :] = out_b.astype(o_ref.dtype)                  # early store


def _pick_batches_per_block(B, L, target_rows=512):
    """Largest divisor of B whose block has <= target_rows token rows."""
    bpb = 1
    for cand in range(1, B + 1):
        if B % cand == 0 and cand * L <= target_rows:
            bpb = cand
    return bpb


def multihead_attention(x, in_proj_weight, in_proj_bias,
                        out_proj_weight, out_proj_bias,
                        *, matmul_dtype=jnp.float32, approx_reciprocal=True):
    """x: (B, L, D). Weights in torch nn.MultiheadAttention layout:
       in_proj_weight (3D, D), in_proj_bias (3D,),
       out_proj_weight (D, D), out_proj_bias (D,)."""
    B, L, D = x.shape
    H, hd = N_HEADS, HEAD_DIM
    assert D == H * hd

    # --- wrapper-side layout plumbing (weight-sized, one-time) --------------
    scale = 1.0 / math.sqrt(hd)
    # torch stores (out, in); transpose for row-major x @ W. Fold the q-scale
    # into W_q and b_q (matches torch: scale applied to q after bias).
    w_q = (in_proj_weight[0 * D:1 * D].T * scale).astype(matmul_dtype)
    w_k = in_proj_weight[1 * D:2 * D].T.astype(matmul_dtype)
    w_v = in_proj_weight[2 * D:3 * D].T.astype(matmul_dtype)
    b_q = (in_proj_bias[0 * D:1 * D] * scale).reshape(1, D).astype(jnp.float32)
    b_k = in_proj_bias[1 * D:2 * D].reshape(1, D).astype(jnp.float32)
    b_v = in_proj_bias[2 * D:3 * D].reshape(1, D).astype(jnp.float32)
    w_o = out_proj_weight.T.astype(matmul_dtype)
    b_o = out_proj_bias.reshape(1, D).astype(jnp.float32)

    x_flat = x.reshape(B * L, D).astype(matmul_dtype)

    bpb = _pick_batches_per_block(B, L)
    num_blocks = B // bpb
    rows = bpb * L

    kernel = partial(_mha_kernel, bpb=bpb, L=L, H=H, hd=hd, D=D,
                     approx_recip=approx_reciprocal)

    token_spec = pl.BlockSpec((rows, D), lambda i: (i, 0))
    resident_w = pl.BlockSpec((D, D), lambda i: (0, 0))   # same block every step
    resident_b = pl.BlockSpec((1, D), lambda i: (0, 0))   #   -> weights stay resident

    out_flat = pl.pallas_call(
        kernel,
        grid=(num_blocks,),
        in_specs=[token_spec,
                  resident_w, resident_w, resident_w,
                  resident_b, resident_b, resident_b,
                  resident_w, resident_b],
        out_specs=pl.BlockSpec((rows, D), lambda i: (i, 0)),
        out_shape=jax.ShapeDtypeStruct((B * L, D), x.dtype),
        compiler_params=pltpu.CompilerParams(
            dimension_semantics=("parallel",)),
    )(x_flat, w_q, w_k, w_v, b_q, b_k, b_v, w_o, b_o)

    return out_flat.reshape(B, L, D)


def reference_mha(x, in_proj_weight, in_proj_bias, out_proj_weight, out_proj_bias):
    """Pure-JAX reference matching torch.nn.MultiheadAttention (eval, no dropout)."""
    B, L, D = x.shape
    qkv = jnp.einsum("bld,ed->ble", x, in_proj_weight) + in_proj_bias
    q, k, v = qkv[..., :D], qkv[..., D:2 * D], qkv[..., 2 * D:]

    def split(t):  # (B, L, D) -> (B, H, L, hd)
        return t.reshape(B, L, N_HEADS, HEAD_DIM).transpose(0, 2, 1, 3)

    q, k, v = split(q), split(k), split(v)
    s = jnp.einsum("bhqd,bhkd->bhqk", q, k) / math.sqrt(HEAD_DIM)
    p = jax.nn.softmax(s, axis=-1)
    o = jnp.einsum("bhqk,bhkd->bhqd", p, v)
    o = o.transpose(0, 2, 1, 3).reshape(B, L, D)
    return jnp.einsum("bld,ed->ble", o, out_proj_weight) + out_proj_bias


if __name__ == "__main__":
    key = jax.random.PRNGKey(0)
    k_x, k_win, k_bin, k_wout, k_bout = jax.random.split(key, 5)

    # Deterministic synthetic parameters (shapes from nn.MultiheadAttention).
    in_proj_weight = jax.random.normal(k_win, (3 * DIM, DIM), jnp.float32) * 0.1
    in_proj_bias = jax.random.normal(k_bin, (3 * DIM,), jnp.float32) * 0.1
    out_proj_weight = jax.random.normal(k_wout, (DIM, DIM), jnp.float32) * 0.1
    out_proj_bias = jax.random.normal(k_bout, (DIM,), jnp.float32) * 0.1

    x = jax.random.normal(k_x, (BATCH, SEQ, DIM), jnp.float32)

    ref = reference_mha(x, in_proj_weight, in_proj_bias,
                        out_proj_weight, out_proj_bias)

    # 1) Strict numerical verification path: f32 operands, exact reciprocal.
    out = multihead_attention(x, in_proj_weight, in_proj_bias,
                              out_proj_weight, out_proj_bias,
                              matmul_dtype=jnp.float32,
                              approx_reciprocal=False)
    out = jax.block_until_ready(out)
    assert out.shape == (BATCH, SEQ, DIM)
    err = float(jnp.max(jnp.abs(out - ref)))
    assert jnp.allclose(out, ref, atol=1e-5, rtol=1e-5), err

    # 2) Production-style path (v6e/v7x): bf16 matmul operands for x and the
    #    projection weights, f32 accumulation + f32 softmax, EUP approx recip.
    out_bf16 = multihead_attention(x, in_proj_weight, in_proj_bias,
                                   out_proj_weight, out_proj_bias,
                                   matmul_dtype=jnp.bfloat16,
                                   approx_reciprocal=True)
    out_bf16 = jax.block_until_ready(out_bf16)
    err_bf16 = float(jnp.max(jnp.abs(out_bf16 - ref)))
    assert jnp.allclose(out_bf16, ref, atol=2e-2, rtol=2e-2), err_bf16

    print("KERNEL_OK")
</pallas_src>

<mosaic_0001>
module attributes {stable_mosaic.version = 11 : i64} {
  func.func @_mha_kernel(%arg0: i32, %arg1: memref<16x32xf32, #tpu.memory_space<vmem>>, %arg2: memref<32x32xf32, #tpu.memory_space<vmem>>, %arg3: memref<32x32xf32, #tpu.memory_space<vmem>>, %arg4: memref<32x32xf32, #tpu.memory_space<vmem>>, %arg5: memref<1x32xf32, #tpu.memory_space<vmem>>, %arg6: memref<1x32xf32, #tpu.memory_space<vmem>>, %arg7: memref<1x32xf32, #tpu.memory_space<vmem>>, %arg8: memref<32x32xf32, #tpu.memory_space<vmem>>, %arg9: memref<1x32xf32, #tpu.memory_space<vmem>>, %arg10: memref<16x32xf32, #tpu.memory_space<vmem>>) attributes {dimension_semantics = [#tpu.dimension_semantics<parallel>], iteration_bounds = array<i64: 1>, scalar_prefetch = 0 : i64, scratch_operands = 0 : i64, tpu.core_type = #tpu.core_type<tc>, window_params = [{transform_indices = @transform_0, window_bounds = array<i64: 16, 32>}, {pipeline_mode = #tpu.pipeline_mode<synchronous>, transform_indices = @transform_1, window_bounds = array<i64: 32, 32>}, {pipeline_mode = #tpu.pipeline_mode<synchronous>, transform_indices = @transform_2, window_bounds = array<i64: 32, 32>}, {pipeline_mode = #tpu.pipeline_mode<synchronous>, transform_indices = @transform_3, window_bounds = array<i64: 32, 32>}, {pipeline_mode = #tpu.pipeline_mode<synchronous>, transform_indices = @transform_4, window_bounds = array<i64: 1, 32>}, {pipeline_mode = #tpu.pipeline_mode<synchronous>, transform_indices = @transform_5, window_bounds = array<i64: 1, 32>}, {pipeline_mode = #tpu.pipeline_mode<synchronous>, transform_indices = @transform_6, window_bounds = array<i64: 1, 32>}, {pipeline_mode = #tpu.pipeline_mode<synchronous>, transform_indices = @transform_7, window_bounds = array<i64: 32, 32>}, {pipeline_mode = #tpu.pipeline_mode<synchronous>, transform_indices = @transform_8, window_bounds = array<i64: 1, 32>}, {transform_indices = @transform_9, window_bounds = array<i64: 16, 32>}]} {
    %c0 = arith.constant 0 : index
    %c0_0 = arith.constant 0 : index
    %0 = vector.load %arg1[%c0, %c0_0] : memref<16x32xf32, #tpu.memory_space<vmem>>, vector<16x32xf32>
    %c0_1 = arith.constant 0 : index
    %c0_2 = arith.constant 0 : index
    %1 = vector.load %arg2[%c0_1, %c0_2] : memref<32x32xf32, #tpu.memory_space<vmem>>, vector<32x32xf32>
    %cst = arith.constant dense<0.000000e+00> : vector<16x32xf32>
    %2 = tpu.matmul %0, %1, %cst {dimension_numbers = #tpu.dot_dimension_numbers<[1], [0], [0], [1], [0, 0, 1, 1], [], []>} : vector<16x32xf32>, vector<32x32xf32>, vector<16x32xf32> -> vector<16x32xf32>
    %c0_3 = arith.constant 0 : index
    %c0_4 = arith.constant 0 : index
    %3 = vector.load %arg5[%c0_3, %c0_4] : memref<1x32xf32, #tpu.memory_space<vmem>>, vector<1x32xf32>
    %4 = vector.broadcast %3 : vector<1x32xf32> to vector<16x32xf32>
    %5 = arith.addf %2, %4 : vector<16x32xf32>
    %c0_5 = arith.constant 0 : index
    %c0_6 = arith.constant 0 : index
    %6 = vector.load %arg3[%c0_5, %c0_6] : memref<32x32xf32, #tpu.memory_space<vmem>>, vector<32x32xf32>
    %cst_7 = arith.constant dense<0.000000e+00> : vector<16x32xf32>
    %7 = tpu.matmul %0, %6, %cst_7 {dimension_numbers = #tpu.dot_dimension_numbers<[1], [0], [0], [1], [0, 0, 1, 1], [], []>} : vector<16x32xf32>, vector<32x32xf32>, vector<16x32xf32> -> vector<16x32xf32>
    %c0_8 = arith.constant 0 : index
    %c0_9 = arith.constant 0 : index
    %8 = vector.load %arg6[%c0_8, %c0_9] : memref<1x32xf32, #tpu.memory_space<vmem>>, vector<1x32xf32>
    %9 = vector.broadcast %8 : vector<1x32xf32> to vector<16x32xf32>
    %10 = arith.addf %7, %9 : vector<16x32xf32>
    %c0_10 = arith.constant 0 : index
    %c0_11 = arith.constant 0 : index
    %11 = vector.load %arg4[%c0_10, %c0_11] : memref<32x32xf32, #tpu.memory_space<vmem>>, vector<32x32xf32>
    %cst_12 = arith.constant dense<0.000000e+00> : vector<16x32xf32>
    %12 = tpu.matmul %0, %11, %cst_12 {dimension_numbers = #tpu.dot_dimension_numbers<[1], [0], [0], [1], [0, 0, 1, 1], [], []>} : vector<16x32xf32>, vector<32x32xf32>, vector<16x32xf32> -> vector<16x32xf32>
    %c0_13 = arith.constant 0 : index
    %c0_14 = arith.constant 0 : index
    %13 = vector.load %arg7[%c0_13, %c0_14] : memref<1x32xf32, #tpu.memory_space<vmem>>, vector<1x32xf32>
    %14 = vector.broadcast %13 : vector<1x32xf32> to vector<16x32xf32>
    %15 = arith.addf %12, %14 : vector<16x32xf32>
    %c0_15 = arith.constant 0 : index
    %c0_16 = arith.constant 0 : index
    %16 = vector.load %arg8[%c0_15, %c0_16] : memref<32x32xf32, #tpu.memory_space<vmem>>, vector<32x32xf32>
    %c0_17 = arith.constant 0 : index
    %c0_18 = arith.constant 0 : index
    %17 = vector.load %arg9[%c0_17, %c0_18] : memref<1x32xf32, #tpu.memory_space<vmem>>, vector<1x32xf32>
    %18 = vector.extract_strided_slice %5 {offsets = [0, 0], sizes = [8, 32], strides = [1, 1]} : vector<16x32xf32> to vector<8x32xf32>
    %19 = vector.extract_strided_slice %10 {offsets = [0, 0], sizes = [8, 32], strides = [1, 1]} : vector<16x32xf32> to vector<8x32xf32>
    %20 = vector.extract_strided_slice %15 {offsets = [0, 0], sizes = [8, 32], strides = [1, 1]} : vector<16x32xf32> to vector<8x32xf32>
    %21 = vector.extract_strided_slice %18 {offsets = [0, 0], sizes = [8, 8], strides = [1, 1]} : vector<8x32xf32> to vector<8x8xf32>
    %22 = vector.extract_strided_slice %19 {offsets = [0, 0], sizes = [8, 8], strides = [1, 1]} : vector<8x32xf32> to vector<8x8xf32>
    %23 = vector.extract_strided_slice %20 {offsets = [0, 0], sizes = [8, 8], strides = [1, 1]} : vector<8x32xf32> to vector<8x8xf32>
    %cst_19 = arith.constant dense<0.000000e+00> : vector<8x8xf32>
    %24 = tpu.matmul %21, %22, %cst_19 {dimension_numbers = #tpu.dot_dimension_numbers<[1], [1], [0], [0], [0, 0, 1, 0], [], []>} : vector<8x8xf32>, vector<8x8xf32>, vector<8x8xf32> -> vector<8x8xf32>
    %cst_20 = arith.constant dense<0xFF800000> : vector<8xf32>
    %25 = vector.multi_reduction <maximumf>, %24, %cst_20 [1] : vector<8x8xf32> to vector<8xf32>
    %26 = vector.shape_cast %25 : vector<8xf32> to vector<8x1xf32>
    %27 = vector.broadcast %26 : vector<8x1xf32> to vector<8x8xf32>
    %28 = arith.subf %24, %27 : vector<8x8xf32>
    %29 = math.exp %28 : vector<8x8xf32>
    %cst_21 = arith.constant dense<0.000000e+00> : vector<8xf32>
    %30 = vector.multi_reduction <add>, %29, %cst_21 [1] : vector<8x8xf32> to vector<8xf32>
    %31 = vector.shape_cast %30 : vector<8xf32> to vector<8x1xf32>
    %32 = tpu.reciprocal %31 : vector<8x1xf32> -> vector<8x1xf32>
    %cst_22 = arith.constant dense<0.000000e+00> : vector<8x8xf32>
    %33 = tpu.matmul %29, %23, %cst_22 {dimension_numbers = #tpu.dot_dimension_numbers<[1], [0], [0], [1], [0, 0, 1, 1], [], []>} : vector<8x8xf32>, vector<8x8xf32>, vector<8x8xf32> -> vector<8x8xf32>
    %34 = vector.broadcast %32 : vector<8x1xf32> to vector<8x8xf32>
    %35 = arith.mulf %33, %34 : vector<8x8xf32>
    %36 = vector.extract_strided_slice %18 {offsets = [0, 8], sizes = [8, 8], strides = [1, 1]} : vector<8x32xf32> to vector<8x8xf32>
    %37 = vector.extract_strided_slice %19 {offsets = [0, 8], sizes = [8, 8], strides = [1, 1]} : vector<8x32xf32> to vector<8x8xf32>
    %38 = vector.extract_strided_slice %20 {offsets = [0, 8], sizes = [8, 8], strides = [1, 1]} : vector<8x32xf32> to vector<8x8xf32>
    %cst_23 = arith.constant dense<0.000000e+00> : vector<8x8xf32>
    %39 = tpu.matmul %36, %37, %cst_23 {dimension_numbers = #tpu.dot_dimension_numbers<[1], [1], [0], [0], [0, 0, 1, 0], [], []>} : vector<8x8xf32>, vector<8x8xf32>, vector<8x8xf32> -> vector<8x8xf32>
    %cst_24 = arith.constant dense<0xFF800000> : vector<8xf32>
    %40 = vector.multi_reduction <maximumf>, %39, %cst_24 [1] : vector<8x8xf32> to vector<8xf32>
    %41 = vector.shape_cast %40 : vector<8xf32> to vector<8x1xf32>
    %42 = vector.broadcast %41 : vector<8x1xf32> to vector<8x8xf32>
    %43 = arith.subf %39, %42 : vector<8x8xf32>
    %44 = math.exp %43 : vector<8x8xf32>
    %cst_25 = arith.constant dense<0.000000e+00> : vector<8xf32>
    %45 = vector.multi_reduction <add>, %44, %cst_25 [1] : vector<8x8xf32> to vector<8xf32>
    %46 = vector.shape_cast %45 : vector<8xf32> to vector<8x1xf32>
    %47 = tpu.reciprocal %46 : vector<8x1xf32> -> vector<8x1xf32>
    %cst_26 = arith.constant dense<0.000000e+00> : vector<8x8xf32>
    %48 = tpu.matmul %44, %38, %cst_26 {dimension_numbers = #tpu.dot_dimension_numbers<[1], [0], [0], [1], [0, 0, 1, 1], [], []>} : vector<8x8xf32>, vector<8x8xf32>, vector<8x8xf32> -> vector<8x8xf32>
    %49 = vector.broadcast %47 : vector<8x1xf32> to vector<8x8xf32>
    %50 = arith.mulf %48, %49 : vector<8x8xf32>
    %51 = vector.extract_strided_slice %18 {offsets = [0, 16], sizes = [8, 8], strides = [1, 1]} : vector<8x32xf32> to vector<8x8xf32>
    %52 = vector.extract_strided_slice %19 {offsets = [0, 16], sizes = [8, 8], strides = [1, 1]} : vector<8x32xf32> to vector<8x8xf32>
    %53 = vector.extract_strided_slice %20 {offsets = [0, 16], sizes = [8, 8], strides = [1, 1]} : vector<8x32xf32> to vector<8x8xf32>
    %cst_27 = arith.constant dense<0.000000e+00> : vector<8x8xf32>
    %54 = tpu.matmul %51, %52, %cst_27 {dimension_numbers = #tpu.dot_dimension_numbers<[1], [1], [0], [0], [0, 0, 1, 0], [], []>} : vector<8x8xf32>, vector<8x8xf32>, vector<8x8xf32> -> vector<8x8xf32>
    %cst_28 = arith.constant dense<0xFF800000> : vector<8xf32>
    %55 = vector.multi_reduction <maximumf>, %54, %cst_28 [1] : vector<8x8xf32> to vector<8xf32>
    %56 = vector.shape_cast %55 : vector<8xf32> to vector<8x1xf32>
    %57 = vector.broadcast %56 : vector<8x1xf32> to vector<8x8xf32>
    %58 = arith.subf %54, %57 : vector<8x8xf32>
    %59 = math.exp %58 : vector<8x8xf32>
    %cst_29 = arith.constant dense<0.000000e+00> : vector<8xf32>
    %60 = vector.multi_reduction <add>, %59, %cst_29 [1] : vector<8x8xf32> to vector<8xf32>
    %61 = vector.shape_cast %60 : vector<8xf32> to vector<8x1xf32>
    %62 = tpu.reciprocal %61 : vector<8x1xf32> -> vector<8x1xf32>
    %cst_30 = arith.constant dense<0.000000e+00> : vector<8x8xf32>
    %63 = tpu.matmul %59, %53, %cst_30 {dimension_numbers = #tpu.dot_dimension_numbers<[1], [0], [0], [1], [0, 0, 1, 1], [], []>} : vector<8x8xf32>, vector<8x8xf32>, vector<8x8xf32> -> vector<8x8xf32>
    %64 = vector.broadcast %62 : vector<8x1xf32> to vector<8x8xf32>
    %65 = arith.mulf %63, %64 : vector<8x8xf32>
    %66 = vector.extract_strided_slice %18 {offsets = [0, 24], sizes = [8, 8], strides = [1, 1]} : vector<8x32xf32> to vector<8x8xf32>
    %67 = vector.extract_strided_slice %19 {offsets = [0, 24], sizes = [8, 8], strides = [1, 1]} : vector<8x32xf32> to vector<8x8xf32>
    %68 = vector.extract_strided_slice %20 {offsets = [0, 24], sizes = [8, 8], strides = [1, 1]} : vector<8x32xf32> to vector<8x8xf32>
    %cst_31 = arith.constant dense<0.000000e+00> : vector<8x8xf32>
    %69 = tpu.matmul %66, %67, %cst_31 {dimension_numbers = #tpu.dot_dimension_numbers<[1], [1], [0], [0], [0, 0, 1, 0], [], []>} : vector<8x8xf32>, vector<8x8xf32>, vector<8x8xf32> -> vector<8x8xf32>
    %cst_32 = arith.constant dense<0xFF800000> : vector<8xf32>
    %70 = vector.multi_reduction <maximumf>, %69, %cst_32 [1] : vector<8x8xf32> to vector<8xf32>
    %71 = vector.shape_cast %70 : vector<8xf32> to vector<8x1xf32>
    %72 = vector.broadcast %71 : vector<8x1xf32> to vector<8x8xf32>
    %73 = arith.subf %69, %72 : vector<8x8xf32>
    %74 = math.exp %73 : vector<8x8xf32>
    %cst_33 = arith.constant dense<0.000000e+00> : vector<8xf32>
    %75 = vector.multi_reduction <add>, %74, %cst_33 [1] : vector<8x8xf32> to vector<8xf32>
    %76 = vector.shape_cast %75 : vector<8xf32> to vector<8x1xf32>
    %77 = tpu.reciprocal %76 : vector<8x1xf32> -> vector<8x1xf32>
    %cst_34 = arith.constant dense<0.000000e+00> : vector<8x8xf32>
    %78 = tpu.matmul %74, %68, %cst_34 {dimension_numbers = #tpu.dot_dimension_numbers<[1], [0], [0], [1], [0, 0, 1, 1], [], []>} : vector<8x8xf32>, vector<8x8xf32>, vector<8x8xf32> -> vector<8x8xf32>
    %79 = vector.broadcast %77 : vector<8x1xf32> to vector<8x8xf32>
    %80 = arith.mulf %78, %79 : vector<8x8xf32>
    %81 = tpu.concatenate %35, %50, %65, %80 in 1 : vector<8x8xf32>, vector<8x8xf32>, vector<8x8xf32>, vector<8x8xf32> -> vector<8x32xf32>
    %cst_35 = arith.constant dense<0.000000e+00> : vector<8x32xf32>
    %82 = tpu.matmul %81, %16, %cst_35 {dimension_numbers = #tpu.dot_dimension_numbers<[1], [0], [0], [1], [0, 0, 1, 1], [], []>} : vector<8x32xf32>, vector<32x32xf32>, vector<8x32xf32> -> vector<8x32xf32>
    %83 = vector.broadcast %17 : vector<1x32xf32> to vector<8x32xf32>
    %84 = arith.addf %82, %83 : vector<8x32xf32>
    %c0_36 = arith.constant 0 : index
    %c0_37 = arith.constant 0 : index
    %85 = vector.load %arg10[%c0_36, %c0_37] : memref<16x32xf32, #tpu.memory_space<vmem>>, vector<8x32xf32>
    tpu.vector_store %arg10[%c0_36, %c0_37], %84 {strides = array<i32>} : memref<16x32xf32, #tpu.memory_space<vmem>>, vector<8x32xf32>,
    %86 = vector.extract_strided_slice %5 {offsets = [8, 0], sizes = [8, 32], strides = [1, 1]} : vector<16x32xf32> to vector<8x32xf32>
    %87 = vector.extract_strided_slice %10 {offsets = [8, 0], sizes = [8, 32], strides = [1, 1]} : vector<16x32xf32> to vector<8x32xf32>
    %88 = vector.extract_strided_slice %15 {offsets = [8, 0], sizes = [8, 32], strides = [1, 1]} : vector<16x32xf32> to vector<8x32xf32>
    %89 = vector.extract_strided_slice %86 {offsets = [0, 0], sizes = [8, 8], strides = [1, 1]} : vector<8x32xf32> to vector<8x8xf32>
    %90 = vector.extract_strided_slice %87 {offsets = [0, 0], sizes = [8, 8], strides = [1, 1]} : vector<8x32xf32> to vector<8x8xf32>
    %91 = vector.extract_strided_slice %88 {offsets = [0, 0], sizes = [8, 8], strides = [1, 1]} : vector<8x32xf32> to vector<8x8xf32>
    %cst_38 = arith.constant dense<0.000000e+00> : vector<8x8xf32>
    %92 = tpu.matmul %89, %90, %cst_38 {dimension_numbers = #tpu.dot_dimension_numbers<[1], [1], [0], [0], [0, 0, 1, 0], [], []>} : vector<8x8xf32>, vector<8x8xf32>, vector<8x8xf32> -> vector<8x8xf32>
    %cst_39 = arith.constant dense<0xFF800000> : vector<8xf32>
    %93 = vector.multi_reduction <maximumf>, %92, %cst_39 [1] : vector<8x8xf32> to vector<8xf32>
    %94 = vector.shape_cast %93 : vector<8xf32> to vector<8x1xf32>
    %95 = vector.broadcast %94 : vector<8x1xf32> to vector<8x8xf32>
    %96 = arith.subf %92, %95 : vector<8x8xf32>
    %97 = math.exp %96 : vector<8x8xf32>
    %cst_40 = arith.constant dense<0.000000e+00> : vector<8xf32>
    %98 = vector.multi_reduction <add>, %97, %cst_40 [1] : vector<8x8xf32> to vector<8xf32>
    %99 = vector.shape_cast %98 : vector<8xf32> to vector<8x1xf32>
    %100 = tpu.reciprocal %99 : vector<8x1xf32> -> vector<8x1xf32>
    %cst_41 = arith.constant dense<0.000000e+00> : vector<8x8xf32>
    %101 = tpu.matmul %97, %91, %cst_41 {dimension_numbers = #tpu.dot_dimension_numbers<[1], [0], [0], [1], [0, 0, 1, 1], [], []>} : vector<8x8xf32>, vector<8x8xf32>, vector<8x8xf32> -> vector<8x8xf32>
    %102 = vector.broadcast %100 : vector<8x1xf32> to vector<8x8xf32>
    %103 = arith.mulf %101, %102 : vector<8x8xf32>
    %104 = vector.extract_strided_slice %86 {offsets = [0, 8], sizes = [8, 8], strides = [1, 1]} : vector<8x32xf32> to vector<8x8xf32>
    %105 = vector.extract_strided_slice %87 {offsets = [0, 8], sizes = [8, 8], strides = [1, 1]} : vector<8x32xf32> to vector<8x8xf32>
    %106 = vector.extract_strided_slice %88 {offsets = [0, 8], sizes = [8, 8], strides = [1, 1]} : vector<8x32xf32> to vector<8x8xf32>
    %cst_42 = arith.constant dense<0.000000e+00> : vector<8x8xf32>
    %107 = tpu.matmul %104, %105, %cst_42 {dimension_numbers = #tpu.dot_dimension_numbers<[1], [1], [0], [0], [0, 0, 1, 0], [], []>} : vector<8x8xf32>, vector<8x8xf32>, vector<8x8xf32> -> vector<8x8xf32>
    %cst_43 = arith.constant dense<0xFF800000> : vector<8xf32>
    %108 = vector.multi_reduction <maximumf>, %107, %cst_43 [1] : vector<8x8xf32> to vector<8xf32>
    %109 = vector.shape_cast %108 : vector<8xf32> to vector<8x1xf32>
    %110 = vector.broadcast %109 : vector<8x1xf32> to vector<8x8xf32>
    %111 = arith.subf %107, %110 : vector<8x8xf32>
    %112 = math.exp %111 : vector<8x8xf32>
    %cst_44 = arith.constant dense<0.000000e+00> : vector<8xf32>
    %113 = vector.multi_reduction <add>, %112, %cst_44 [1] : vector<8x8xf32> to vector<8xf32>
    %114 = vector.shape_cast %113 : vector<8xf32> to vector<8x1xf32>
    %115 = tpu.reciprocal %114 : vector<8x1xf32> -> vector<8x1xf32>
    %cst_45 = arith.constant dense<0.000000e+00> : vector<8x8xf32>
    %116 = tpu.matmul %112, %106, %cst_45 {dimension_numbers = #tpu.dot_dimension_numbers<[1], [0], [0], [1], [0, 0, 1, 1], [], []>} : vector<8x8xf32>, vector<8x8xf32>, vector<8x8xf32> -> vector<8x8xf32>
    %117 = vector.broadcast %115 : vector<8x1xf32> to vector<8x8xf32>
    %118 = arith.mulf %116, %117 : vector<8x8xf32>
    %119 = vector.extract_strided_slice %86 {offsets = [0, 16], sizes = [8, 8], strides = [1, 1]} : vector<8x32xf32> to vector<8x8xf32>
    %120 = vector.extract_strided_slice %87 {offsets = [0, 16], sizes = [8, 8], strides = [1, 1]} : vector<8x32xf32> to vector<8x8xf32>
    %121 = vector.extract_strided_slice %88 {offsets = [0, 16], sizes = [8, 8], strides = [1, 1]} : vector<8x32xf32> to vector<8x8xf32>
    %cst_46 = arith.constant dense<0.000000e+00> : vector<8x8xf32>
    %122 = tpu.matmul %119, %120, %cst_46 {dimension_numbers = #tpu.dot_dimension_numbers<[1], [1], [0], [0], [0, 0, 1, 0], [], []>} : vector<8x8xf32>, vector<8x8xf32>, vector<8x8xf32> -> vector<8x8xf32>
    %cst_47 = arith.constant dense<0xFF800000> : vector<8xf32>
    %123 = vector.multi_reduction <maximumf>, %122, %cst_47 [1] : vector<8x8xf32> to vector<8xf32>
    %124 = vector.shape_cast %123 : vector<8xf32> to vector<8x1xf32>
    %125 = vector.broadcast %124 : vector<8x1xf32> to vector<8x8xf32>
    %126 = arith.subf %122, %125 : vector<8x8xf32>
    %127 = math.exp %126 : vector<8x8xf32>
    %cst_48 = arith.constant dense<0.000000e+00> : vector<8xf32>
    %128 = vector.multi_reduction <add>, %127, %cst_48 [1] : vector<8x8xf32> to vector<8xf32>
    %129 = vector.shape_cast %128 : vector<8xf32> to vector<8x1xf32>
    %130 = tpu.reciprocal %129 : vector<8x1xf32> -> vector<8x1xf32>
    %cst_49 = arith.constant dense<0.000000e+00> : vector<8x8xf32>
    %131 = tpu.matmul %127, %121, %cst_49 {dimension_numbers = #tpu.dot_dimension_numbers<[1], [0], [0], [1], [0, 0, 1, 1], [], []>} : vector<8x8xf32>, vector<8x8xf32>, vector<8x8xf32> -> vector<8x8xf32>
    %132 = vector.broadcast %130 : vector<8x1xf32> to vector<8x8xf32>
    %133 = arith.mulf %131, %132 : vector<8x8xf32>
    %134 = vector.extract_strided_slice %86 {offsets = [0, 24], sizes = [8, 8], strides = [1, 1]} : vector<8x32xf32> to vector<8x8xf32>
    %135 = vector.extract_strided_slice %87 {offsets = [0, 24], sizes = [8, 8], strides = [1, 1]} : vector<8x32xf32> to vector<8x8xf32>
    %136 = vector.extract_strided_slice %88 {offsets = [0, 24], sizes = [8, 8], strides = [1, 1]} : vector<8x32xf32> to vector<8x8xf32>
    %cst_50 = arith.constant dense<0.000000e+00> : vector<8x8xf32>
    %137 = tpu.matmul %134, %135, %cst_50 {dimension_numbers = #tpu.dot_dimension_numbers<[1], [1], [0], [0], [0, 0, 1, 0], [], []>} : vector<8x8xf32>, vector<8x8xf32>, vector<8x8xf32> -> vector<8x8xf32>
    %cst_51 = arith.constant dense<0xFF800000> : vector<8xf32>
    %138 = vector.multi_reduction <maximumf>, %137, %cst_51 [1] : vector<8x8xf32> to vector<8xf32>
    %139 = vector.shape_cast %138 : vector<8xf32> to vector<8x1xf32>
    %140 = vector.broadcast %139 : vector<8x1xf32> to vector<8x8xf32>
    %141 = arith.subf %137, %140 : vector<8x8xf32>
    %142 = math.exp %141 : vector<8x8xf32>
    %cst_52 = arith.constant dense<0.000000e+00> : vector<8xf32>
    %143 = vector.multi_reduction <add>, %142, %cst_52 [1] : vector<8x8xf32> to vector<8xf32>
    %144 = vector.shape_cast %143 : vector<8xf32> to vector<8x1xf32>
    %145 = tpu.reciprocal %144 : vector<8x1xf32> -> vector<8x1xf32>
    %cst_53 = arith.constant dense<0.000000e+00> : vector<8x8xf32>
    %146 = tpu.matmul %142, %136, %cst_53 {dimension_numbers = #tpu.dot_dimension_numbers<[1], [0], [0], [1], [0, 0, 1, 1], [], []>} : vector<8x8xf32>, vector<8x8xf32>, vector<8x8xf32> -> vector<8x8xf32>
    %147 = vector.broadcast %145 : vector<8x1xf32> to vector<8x8xf32>
    %148 = arith.mulf %146, %147 : vector<8x8xf32>
    %149 = tpu.concatenate %103, %118, %133, %148 in 1 : vector<8x8xf32>, vector<8x8xf32>, vector<8x8xf32>, vector<8x8xf32> -> vector<8x32xf32>
    %cst_54 = arith.constant dense<0.000000e+00> : vector<8x32xf32>
    %150 = tpu.matmul %149, %16, %cst_54 {dimension_numbers = #tpu.dot_dimension_numbers<[1], [0], [0], [1], [0, 0, 1, 1], [], []>} : vector<8x32xf32>, vector<32x32xf32>, vector<8x32xf32> -> vector<8x32xf32>
    %151 = vector.broadcast %17 : vector<1x32xf32> to vector<8x32xf32>
    %152 = arith.addf %150, %151 : vector<8x32xf32>
    %c8 = arith.constant 8 : index
    %c0_55 = arith.constant 0 : index
    %153 = vector.load %arg10[%c8, %c0_55] : memref<16x32xf32, #tpu.memory_space<vmem>>, vector<8x32xf32>
    tpu.vector_store %arg10[%c8, %c0_55], %152 {strides = array<i32>} : memref<16x32xf32, #tpu.memory_space<vmem>>, vector<8x32xf32>,
    return
  }
  func.func @transform_0(%arg0: i32) -> (i32, i32) {
    %c0_i32 = arith.constant 0 : i32
    %c0_i32_0 = arith.constant 0 : i32
    return %arg0, %c0_i32 : i32, i32
  }
  func.func @transform_1(%arg0: i32) -> (i32, i32) {
    %c0_i32 = arith.constant 0 : i32
    %c0_i32_0 = arith.constant 0 : i32
    %c0_i32_1 = arith.constant 0 : i32
    return %c0_i32, %c0_i32_0 : i32, i32
  }
  func.func @transform_2(%arg0: i32) -> (i32, i32) {
    %c0_i32 = arith.constant 0 : i32
    %c0_i32_0 = arith.constant 0 : i32
    %c0_i32_1 = arith.constant 0 : i32
    return %c0_i32, %c0_i32_0 : i32, i32
  }
  func.func @transform_3(%arg0: i32) -> (i32, i32) {
    %c0_i32 = arith.constant 0 : i32
    %c0_i32_0 = arith.constant 0 : i32
    %c0_i32_1 = arith.constant 0 : i32
    return %c0_i32, %c0_i32_0 : i32, i32
  }
  func.func @transform_4(%arg0: i32) -> (i32, i32) {
    %c0_i32 = arith.constant 0 : i32
    %c0_i32_0 = arith.constant 0 : i32
    %c0_i32_1 = arith.constant 0 : i32
    return %c0_i32, %c0_i32_0 : i32, i32
  }
  func.func @transform_5(%arg0: i32) -> (i32, i32) {
    %c0_i32 = arith.constant 0 : i32
    %c0_i32_0 = arith.constant 0 : i32
    %c0_i32_1 = arith.constant 0 : i32
    return %c0_i32, %c0_i32_0 : i32, i32
  }
  func.func @transform_6(%arg0: i32) -> (i32, i32) {
    %c0_i32 = arith.constant 0 : i32
    %c0_i32_0 = arith.constant 0 : i32
    %c0_i32_1 = arith.constant 0 : i32
    return %c0_i32, %c0_i32_0 : i32, i32
  }
  func.func @transform_7(%arg0: i32) -> (i32, i32) {
    %c0_i32 = arith.constant 0 : i32
    %c0_i32_0 = arith.constant 0 : i32
    %c0_i32_1 = arith.constant 0 : i32
    return %c0_i32, %c0_i32_0 : i32, i32
  }
  func.func @transform_8(%arg0: i32) -> (i32, i32) {
    %c0_i32 = arith.constant 0 : i32
    %c0_i32_0 = arith.constant 0 : i32
    %c0_i32_1 = arith.constant 0 : i32
    return %c0_i32, %c0_i32_0 : i32, i32
  }
  func.func @transform_9(%arg0: i32) -> (i32, i32) {
    %c0_i32 = arith.constant 0 : i32
    %c0_i32_0 = arith.constant 0 : i32
    return %arg0, %c0_i32 : i32, i32
  }
}

</mosaic_0001>

<bundles_post_ra>
// kernel: tpu_custom_call.1
= control target key start
LH: loop header
LB: loop body
LE: loop exit
PB: predicated region body
PF: predicated region fallthrough
CT: control target
= control target key end

     0   :  { %14 = vsyncpa [#allocation3], 0  ;;  %s2594_s0 = inlined_call_operand.hbm [shape: f32[16,32], index: 0, kind: input, shape index: {}]   ;;  %s2595_s1 = inlined_call_operand.hbm [shape: f32[32,32], index: 1, kind: input, shape index: {}]   ;;  %s2596_s2 = inlined_call_operand.hbm [shape: f32[32,32], index: 2, kind: input, shape index: {}]   ;;  %s2597_s3 = inlined_call_operand.hbm [shape: f32[32,32], index: 3, kind: input, shape index: {}]   ;;  %s2598_s4 = inlined_call_operand.vmem [shape: f32[1,32], index: 4, kind: input, shape index: {}]   ;;  %s2599_s5 = inlined_call_operand.vmem [shape: f32[1,32], index: 5, kind: input, shape index: {}]   ;;  %s2600_s6 = inlined_call_operand.vmem [shape: f32[1,32], index: 6, kind: input, shape index: {}]   ;;  %s2601_s7 = inlined_call_operand.hbm [shape: f32[32,32], index: 7, kind: input, shape index: {}]   ;;  %s2602_s8 = inlined_call_operand.vmem [shape: f32[1,32], index: 8, kind: input, shape index: {}]   ;;  %s2603_s9 = inlined_call_operand.hbm [shape: f32[16,32], index: 9, kind: output, shape index: {}]  }
   0x1   :  { %15 = vsyncpa [#allocation6], 0 }
   0x2   :  { %16 = vsyncpa [#allocation9], 0 }
   0x3   :  { %17 = vsyncpa [#allocation4], 0  ;;  %s2297_s30 = smov [#allocation5]   ;;  %s2298_s11 = smov [#allocation8]  }
   0x4   :  { %s35_s10 = sshll.u32 %s2297_s30, 4  ;;  %s59_s12 = sshll.u32 %s2298_s11, 4  ;;  %s36_s10 = int_to_ptr.vmem [resolvable:$true] %s35_s10  ;;  %s60_s12 = int_to_ptr.vmem [resolvable:$true] %s59_s12 }
   0x5   :  { %s2177_s13 = scalar_lea.vmem %s36_s10, 512  ;;  %p2182_p1 = scmp.lt.s32.totalorder %s36_s10, %s36_s10 }
   0x6   :  { %p2178_p0 = scmp.ne.s32.totalorder %s36_s10, %s2177_s13  ;;  %p2183_p2 = scmp.lt.s32.totalorder %s2177_s13, %s2177_s13 }
   0x8   :  { %p2184_p3 = por %p2183_p2, %p2182_p1 }
   0xa   :  { %p2185_p4 = pnand %p2184_p3, %p2178_p0 }
   0xc   :  { %2188 = shalt.err (!%p2185_p4)
}
   0xd   :  { %s2299_s14 = smov 128   ;;  %s2300_s15 = smov 8  }
   0xe   :  { %41 = dma.hbm_to_vmem [thread:$0]  %s2595_s1, 512, %s36_s10, [#allocation6], %s2299_s14, %s2299_s14, %s2300_s15  }
   0xf   :  { %s2197_s18 = scalar_lea.vmem %s60_s12, 512  ;;  %p2202_p6 = scmp.lt.s32.totalorder %s60_s12, %s60_s12 }
  0x10   :  { %p2198_p5 = scmp.ne.s32.totalorder %s60_s12, %s2197_s18  ;;  %p2203_p7 = scmp.lt.s32.totalorder %s2197_s18, %s2197_s18 }
  0x12   :  { %p2204_p8 = por %p2203_p7, %p2202_p6 }
  0x14   :  { %p2205_p9 = pnand %p2204_p8, %p2198_p5 }
  0x16   :  { %2208 = shalt.err (!%p2205_p9)
}
  0x17   :  { %65 = dma.hbm_to_vmem [thread:$0]  %s2597_s3, 512, %s60_s12, [#allocation9], %s2299_s14, %s2299_s14, %s2300_s15  }
  0x18   :  { %s2301_s21 = smov [#allocation2]   ;;  %s2302_s23 = smov [#allocation7]  }
  0x19   :  { %s23_s22 = sshll.u32 %s2301_s21, 4  ;;  %s47_s24 = sshll.u32 %s2302_s23, 4  ;;  %s24_s22 = int_to_ptr.vmem [resolvable:$true] %s23_s22  ;;  %s48_s24 = int_to_ptr.vmem [resolvable:$true] %s47_s24 }
  0x1a   :  { %s2217_s1 = scalar_lea.vmem %s24_s22, 256  ;;  %p2222_p11 = scmp.lt.s32.totalorder %s24_s22, %s24_s22 }
  0x1b   :  { %p2218_p10 = scmp.ne.s32.totalorder %s24_s22, %s2217_s1  ;;  %p2223_p12 = scmp.lt.s32.totalorder %s2217_s1, %s2217_s1 }
  0x1d   :  { %p2224_p13 = por %p2223_p12, %p2222_p11 }
  0x1f   :  { %p2225_p0 = pnand %p2224_p13, %p2218_p10 }
  0x21   :  { %2228 = shalt.err (!%p2225_p0)
}
  0x22   :  { %29 = dma.hbm_to_vmem [thread:$0]  %s2594_s0, 256, %s24_s22, [#allocation3], %s2299_s14, %s2299_s14, %s2300_s15  }
  0x23   :  { %s2237_s3 = scalar_lea.vmem %s48_s24, 512  ;;  %p2242_p2 = scmp.lt.s32.totalorder %s48_s24, %s48_s24 }
  0x24   :  { %p2238_p1 = scmp.ne.s32.totalorder %s48_s24, %s2237_s3  ;;  %p2243_p3 = scmp.lt.s32.totalorder %s2237_s3, %s2237_s3 }
  0x26   :  { %p2244_p4 = por %p2243_p3, %p2242_p2 }
  0x28   :  { %p2245_p5 = pnand %p2244_p4, %p2238_p1 }
  0x2a   :  { %2248 = shalt.err (!%p2245_p5)
}
  0x2b   :  { %53 = dma.hbm_to_vmem [thread:$0]  %s2596_s2, 512, %s48_s24, [#allocation6], %s2299_s14, %s2299_s14, %s2300_s15  }
  0x2c   :  { %s2303_s29 = smov [#allocation10]  }
  0x2d   :  { %s77_s30 = sshll.u32 %s2303_s29, 4  ;;  %s78_s30 = int_to_ptr.vmem [resolvable:$true] %s77_s30 }
  0x2e   :  { %s2257_s10 = scalar_lea.vmem %s78_s30, 512  ;;  %p2262_p7 = scmp.lt.s32.totalorder %s78_s30, %s78_s30 }
  0x2f   :  { %p2258_p6 = scmp.ne.s32.totalorder %s78_s30, %s2257_s10  ;;  %p2263_p8 = scmp.lt.s32.totalorder %s2257_s10, %s2257_s10 }
  0x31   :  { %p2264_p9 = por %p2263_p8, %p2262_p7 }
  0x33   :  { %p2265_p10 = pnand %p2264_p9, %p2258_p6 }
  0x35   :  { %2268 = shalt.err (!%p2265_p10)
}
  0x36   :  { %83 = dma.hbm_to_vmem [thread:$0]  %s2601_s7, 512, %s78_s30, [#allocation9], %s2299_s14, %s2299_s14, %s2300_s15  }
  0x37   :  { %2289 = dma.done.wait [#allocation3], 256  }
  0x38   :  { %2290 = vsyncadd [#allocation3], 4294967040 }
  0x39   :  { %2291 = dma.done.wait [#allocation6], 1024  }
  0x3a   :  { %2292 = vsyncadd [#allocation6], 4294966272 }
  0x3b   :  { %2293 = dma.done.wait [#allocation9], 1024  }
  0x3c   :  { %2294 = vsyncadd [#allocation9], 4294966272  ;;  %v106_v0 = vld [vmem:[#allocation5 + $0x18] sm:$0xff]  ;;  %v105_v2 = vld [vmem:[#allocation5 + $0x10] sm:$0xff]  ;;  %vm114_vm0 = vcmask 261120   ;;  %v2304_v10 = vmov 0.0  }
  0x3d   :  { %v199_v1 = vld [vmem:[#allocation7 + $0x18] sm:$0xff]  ;;  %1987 = vmatprep.subr.mxu0 %v106_v0  ;;  %v198_v3 = vld [vmem:[#allocation7 + $0x10] sm:$0xff]  ;;  %v104_v4 = vld [vmem:[#allocation5 + $0x8] sm:$0xff]  ;;  %vm2305_vm1 = vmmov 0   ;;  %vm373_vm2 = vcmask 64512   ;;  %s2306_s16 = smov 120  }
  0x3e   :  { %1998 = vmatprep.subr.mxu1 %v199_v1  ;;  %1988 = vmatpush3.msra.mxu0 %v106_v0  ;;  %v197_v5 = vld [vmem:[#allocation7 + $0x8] sm:$0xff]  ;;  %v103_v6 = vld [vmem:[#allocation5] sm:$0xff]  ;;  %v101_v8 = vld [vmem:[#allocation2] sm:$0xff]  ;;  %s2310_s19 = smov 24   ;;  %vm1043_vm3 = vcmask 130048   ;;  %vm1045_vm4 = vcmask 195584  }
  0x3f   :  { %1999 = vmatpush3.msra.mxu1 %v199_v1  ;;  %1989 = vmatprep.subr.mxu0 %v105_v2  ;;  %v196_v7 = vld [vmem:[#allocation7] sm:$0xff]  ;;  %v102_v9 = vld [vmem:[#allocation2 + $0x8] sm:$0xff]  ;;  %v284_v12 = vld [vmem:[#allocation8 + $0x10] sm:$0xff] }
  0x40   :  { %2000 = vmatprep.subr.mxu1 %v198_v3  ;;  %1990 = vmatpush3.msra.mxu0 %v105_v2  ;;  %v285_v11 = vld [vmem:[#allocation8 + $0x18] sm:$0xff]  ;;  %v283_v13 = vld [vmem:[#allocation8 + $0x8] sm:$0xff]  ;;  %v282_v14 = vld [vmem:[#allocation8] sm:$0xff] }
  0x41   :  { %2001 = vmatpush3.msra.mxu1 %v198_v3  ;;  %1991 = vmatprep.subr.mxu0 %v104_v4  ;;  %v1891_v15 = vld [vmem:[%s2598_s4] ss:$0 sm:$0xff]  ;;  %s2307_s4 = smov 112  }
  0x42   :  { %2002 = vmatprep.subr.mxu1 %v197_v5  ;;  %1992 = vmatpush3.msra.mxu0 %v104_v4  ;;  %v1894_v16 = vld [vmem:[%s2599_s5] ss:$0 sm:$0xff]  ;;  %s2308_s5 = smov 104  }
  0x43   :  { %2003 = vmatpush3.msra.mxu1 %v197_v5  ;;  %1993 = vmatprep.subr.mxu0 %v103_v6  ;;  %v1897_v30 = vld [vmem:[%s2600_s6] ss:$0 sm:$0xff]  ;;  %s2309_s6 = smov 16  }
  0x44   :  { %2004 = vmatprep.subr.mxu1 %v196_v7  ;;  %1994 = vmatpush3.msra.mxu0 %v103_v6 }
  0x45   :  { %1995 = vmatprep.mubr.msk.f32.mxu0 %vm114_vm0, %v101_v8  ;;  %2005 = vmatpush3.msra.mxu1 %v196_v7 }
  0x46   :  { %2006 = vmatprep.mubr.msk.f32.mxu1 %vm114_vm0, %v101_v8  ;;  %1996 = vmatmul.mubr.msk.f32.vlgmr.msra.gmra.mxu0 %vm114_vm0, %v102_v9 }
  0x47   :  { %2007 = vmatmul.mubr.msk.f32.vlgmr.msra.gmra.mxu1 %vm114_vm0, %v102_v9  ;;  %2017 = vmatprep.mubr.msk.f32.mxu0 %vm114_vm0, %v101_v8 }
  0x48   :  { %2020 = vmatprep.subr.mxu1 %v2304_v10  ;;  %2022 = vmatprep.mubr.msk.f32.mxu1 %vm2305_vm1, %v2304_v10 }
  0x49   :  { %2009 = vmatprep.subr.mxu0 %v285_v11 }
  0x4a   :  { %2010 = vmatpush3.msra.mxu0 %v285_v11 }
  0x4b   :  { %2011 = vmatprep.subr.mxu0 %v284_v12 }
  0x4c   :  { %2012 = vmatpush3.msra.mxu0 %v284_v12  ;;  %v2483_v12 = vld [vmem:[#allocation10 + $0x18] sm:$0xff] }
  0x4d   :  { %2013 = vmatprep.subr.mxu0 %v283_v13 }
  0x4e   :  { %2014 = vmatpush3.msra.mxu0 %v283_v13 }
  0x4f   :  { %2015 = vmatprep.subr.mxu0 %v282_v14 }
  0x50   :  { %2016 = vmatpush3.msra.mxu0 %v282_v14  ;;  %v2487_v14 = vld [vmem:[#allocation10 + $0x10] sm:$0xff] }
  0x51   :  { %2040 = vmatprep.subr.mxu0 %v2304_v10  ;;  %2018 = vmatmul.mubr.msk.f32.vlgmr.msra.gmra.mxu0 %vm114_vm0, %v102_v9 }
  0x52   :  { %2042 = vmatprep.mubr.msk.f32.mxu0 %vm2305_vm1, %v2304_v10 }
 0x106   :  { %v1997_v17 = vpop.f32.mrf.mxu0 }
 0x107   :  { %v2008_v18 = vpop.f32.mrf.mxu1  ;;  %v2410_v19 = vadd.f32 %v1997_v17, %v1891_v15 }
 0x108   :  { %v2412_v20 = vadd.f32 %v2008_v18, %v1894_v16  ;;  %v187_v21 = vpop.f32.mrf.mxu0 }
 0x109   :  { %v273_v22 = vpop.f32.mrf.mxu1  ;;  %v188_v23 = vadd.f32 %v1891_v15, %v187_v21  ;;  %v2489_v15 = vld [vmem:[#allocation10 + $0x8] sm:$0xff] }
 0x10a   :  { %v274_v24 = vadd.f32 %v1894_v16, %v273_v22  ;;  %v2495_v16 = vld [vmem:[#allocation10] sm:$0xff] }
 0x10b   :  { %534 = vrot.lane.b32.xlu1 %v188_v23, %s2306_s16 }
 0x10c   :  { %2021 = vmatpush3.xpose.msk.msra.mxu1 %vm373_vm2, %v274_v24 }
 0x10d   :  { %2025 = vmatprep.subr.mxu1 %v2304_v10 }
 0x10f   :  { %2023 = vmatmul.mubr.msk.f32.vlgmr.msra.gmra.mxu1 %vm373_vm2, %v188_v23  ;;  %702 = vrot.lane.b32.xlu1 %v274_v24, %s2307_s4 }
 0x110   :  { %2027 = vmatprep.mubr.msk.f32.mxu1 %vm2305_vm1, %v2304_v10 }
 0x111   :  { %v2019_v31 = vpop.f32.mrf.mxu0 }
 0x112   :  { %v2437_v32 = vadd.f32 %v2019_v31, %v1897_v30 }
 0x113   :  { %700 = vrot.lane.b32.xlu1 %v188_v23, %s2307_s4  ;;  %v359_v33 = vpop.f32.mrf.mxu0 }
 0x114   :  { %v360_v34 = vadd.f32 %v1897_v30, %v359_v33 }
 0x116   :  { %2026 = vmatpush3.msra.mxu1 %v360_v34 }
 0x117   :  { %867 = vrot.lane.b32.xlu1 %v274_v24, %s2308_s5  ;;  %2030 = vmatprep.subr.mxu1 %v2304_v10 }
 0x11b   :  { %865 = vrot.lane.b32.xlu1 %v188_v23, %s2308_s5 }
 0x17d   :  { %v535_v25 = vpop.permute.xlu1 %534 }
 0x181   :  { %v703_v26 = vpop.permute.xlu1 %702 }
 0x182   :  { %2041 = vmatpush3.xpose.msk.msra.mxu0 %vm373_vm2, %v703_v26 }
 0x183   :  { %2050 = vmatprep.subr.mxu0 %v2304_v10 }
 0x185   :  { %v701_v27 = vpop.permute.xlu1 %700 }
 0x186   :  { %2043 = vmatmul.mubr.msk.f32.vlgmr.msra.gmra.mxu0 %vm373_vm2, %v701_v27 }
 0x187   :  { %2052 = vmatprep.mubr.msk.f32.mxu0 %vm2305_vm1, %v2304_v10 }
 0x189   :  { %v868_v28 = vpop.permute.xlu1 %867 }
 0x18a   :  { %2051 = vmatpush3.xpose.msk.msra.mxu0 %vm373_vm2, %v868_v28 }
 0x18b   :  { %2060 = vmatprep.subr.mxu0 %v2304_v10 }
 0x18d   :  { %v866_v29 = vpop.permute.xlu1 %865 }
 0x18e   :  { %2053 = vmatmul.mubr.msk.f32.vlgmr.msra.gmra.mxu0 %vm373_vm2, %v866_v29 }
 0x18f   :  { %2068 = vmatprep.mubr.msk.f32.mxu0 %vm2305_vm1, %v2304_v10  ;;  %2061 = vmatpush3.msra.mxu0 %v2483_v12 }
 0x190   :  { %2062 = vmatprep.subr.mxu0 %v2304_v10 }
 0x191   :  { %2063 = vmatpush3.msra.mxu0 %v2487_v14 }
 0x192   :  { %2064 = vmatprep.subr.mxu0 %v2304_v10 }
 0x193   :  { %2065 = vmatpush3.msra.mxu0 %v2489_v15 }
 0x194   :  { %2066 = vmatprep.subr.mxu0 %v2304_v10 }
 0x195   :  { %2067 = vmatpush3.msra.mxu0 %v2495_v16 }
 0x196   :  { %2081 = vmatprep.subr.mxu0 %v2304_v10 }
 0x1cf   :  { %v446_v35 = vpop.f32.mrf.mxu1 }
 0x1d0   :  { %v450_v36 = vsel %vm373_vm2, %v446_v35, -inf }
 0x1d1   :  { %451 = vmax.xlane.f32.xlu0 %v450_v36  ;;  %v2024_v37 = vpop.f32.mrf.mxu1 }
 0x1e7   :  { %536 = vrot.lane.b32.xlu0 %v274_v24, %s2306_s16 }
 0x246   :  { %v774_v38 = vpop.f32.mrf.mxu0 }
 0x247   :  { %v778_v39 = vsel %vm373_vm2, %v774_v38, -inf }
 0x248   :  { %v2044_v40 = vpop.f32.mrf.mxu0  ;;  %779 = vmax.xlane.f32.xlu0 %v778_v39 }
 0x24e   :  { %v939_v41 = vpop.f32.mrf.mxu0 }
 0x24f   :  { %v943_v42 = vsel %vm373_vm2, %v939_v41, -inf }
 0x250   :  { %944 = vmax.xlane.f32.xlu1 %v943_v42  ;;  %v2054_v43 = vpop.f32.mrf.mxu0 }
 0x25a   :  { %v452_v44 = vpop.xlane.xlu0 %451 }
 0x25b   :  { %v453_v45 = vsub.f32 %v446_v35, %v452_v44 }
 0x25d   :  { %v454_v46 = vmul.f32 1.442695, %v453_v45 }
 0x25e   :  { %623 = vrot.lane.b32.xlu0 %v360_v34, %s2306_s16  ;;  %v537_v48 = vpop.permute.xlu0 %536 }
 0x25f   :  { %2137 = vpow2.f32 %v454_v46 }
 0x26c   :  { %v2138_v47 = vpop.eup %2137 }
 0x26d   :  { %2028 = vmatmul.mubr.msk.f32.vlgmr.msra.gmra.mxu1 %vm373_vm2, %v2138_v47  ;;  %v456_v8 = vsel %vm373_vm2, %v2138_v47, 0.0 }
 0x26e   :  { %2031 = vmatpush3.xpose.msk.msra.mxu1 %vm373_vm2, %v537_v48  ;;  %2032 = vmatprep.mubr.msk.f32.mxu1 %vm2305_vm1, %v2304_v10 }
 0x26f   :  { %2035 = vmatprep.subr.mxu1 %v2304_v10 }
 0x271   :  { %2033 = vmatmul.mubr.msk.f32.vlgmr.msra.gmra.mxu1 %vm373_vm2, %v535_v25 }
 0x272   :  { %2037 = vmatprep.mubr.msk.f32.mxu1 %vm2305_vm1, %v2304_v10 }
 0x2d1   :  { %v780_v49 = vpop.xlane.xlu0 %779 }
 0x2d2   :  { %v781_v56 = vsub.f32 %v774_v38, %v780_v49 }
 0x2d4   :  { %v782_v57 = vmul.f32 1.442695, %v781_v56 }
 0x2d5   :  { %v624_v50 = vpop.permute.xlu0 %623 }
 0x2d6   :  { %2036 = vmatpush3.msra.mxu1 %v624_v50  ;;  %2139 = vpow2.f32 %v782_v57 }
 0x2d7   :  { %2045 = vmatprep.subr.mxu1 %v2304_v10 }
 0x2d9   :  { %v945_v60 = vpop.xlane.xlu1 %944 }
 0x2da   :  { %v946_v61 = vsub.f32 %v939_v41, %v945_v60 }
 0x2dc   :  { %v947_v0 = vmul.f32 1.442695, %v946_v61 }
 0x2e3   :  { %v2140_v58 = vpop.eup %2139 }
 0x2e4   :  { %v784_v59 = vsel %vm373_vm2, %v2140_v58, 0.0 }
 0x32d   :  { %v2454_v51 = vpop.f32.mrf.mxu1 }
 0x32f   :  { %v2029_v52 = vpop.f32.mrf.mxu1 }
 0x330   :  { %v2552_v52 = vld [vmem:[%s2602_s8] ss:$0 sm:$0xff]  ;;  %s2311_s8 = smov [#allocation11]  }
 0x331   :  { %v608_v53 = vpop.f32.mrf.mxu1  ;;  %s1877_s22 = sshll.u32 %s2311_s8, 4  ;;  %s1878_s22 = int_to_ptr.vmem [resolvable:$true] %s1877_s22 }
 0x332   :  { %v612_v54 = vsel %vm373_vm2, %v608_v53, -inf  ;;  %s2269_s23 = scalar_lea.vmem %s1878_s22, 256  ;;  %p2274_p12 = scmp.lt.s32.totalorder %s1878_s22, %s1878_s22 }
 0x333   :  { %613 = vmax.xlane.f32.xlu1 %v612_v54  ;;  %v2034_v55 = vpop.f32.mrf.mxu1  ;;  %p2270_p11 = scmp.ne.s32.totalorder %s1878_s22, %s2269_s23  ;;  %p2275_p13 = scmp.lt.s32.totalorder %s2269_s23, %s2269_s23 }
 0x335   :  { %p2276_p0 = por %p2275_p13, %p2274_p12 }
 0x337   :  { %p2277_p1 = pnand %p2276_p0, %p2270_p11 }
 0x344   :  { %788 = vrot.lane.b32.xlu1 %v360_v34, %s2307_s4 }
 0x348   :  { %953 = vrot.lane.b32.xlu1 %v360_v34, %s2308_s5 }
 0x36c   :  { %785 = vadd.xlane.f32.xlu1 %v784_v59 }
 0x3bc   :  { %v614_v62 = vpop.xlane.xlu1 %613 }
 0x3bd   :  { %v615_v63 = vsub.f32 %v608_v53, %v614_v62 }
 0x3bf   :  { %v616_v1 = vmul.f32 1.442695, %v615_v63 }
 0x3c0   :  { %v789_v2 = vpop.permute.xlu1 %788 }
 0x3c1   :  { %2141 = vpow2.f32 %v616_v1 }
 0x3c2   :  { %2143 = vpow2.f32 %v947_v0 }
 0x3c4   :  { %v954_v6 = vpop.permute.xlu1 %953 }
 0x3ce   :  { %v2142_v3 = vpop.eup %2141 }
 0x3cf   :  { %2038 = vmatmul.mubr.msk.f32.vlgmr.msra.gmra.mxu1 %vm373_vm2, %v2142_v3  ;;  %v618_v4 = vsel %vm373_vm2, %v2142_v3, 0.0  ;;  %v2144_v5 = vpop.eup %2143 }
 0x3d0   :  { %2046 = vmatpush3.msra.mxu1 %v789_v2  ;;  %619 = vadd.xlane.f32.xlu0 %v618_v4  ;;  %v949_v7 = vsel %vm373_vm2, %v2144_v5, 0.0 }
 0x3d1   :  { %2047 = vmatprep.mubr.msk.f32.mxu1 %vm2305_vm1, %v2304_v10  ;;  %2055 = vmatprep.subr.mxu1 %v2304_v10 }
 0x3d3   :  { %2048 = vmatmul.mubr.msk.f32.vlgmr.msra.gmra.mxu1 %vm373_vm2, %v2140_v58 }
 0x3d4   :  { %2056 = vmatpush3.msra.mxu1 %v954_v6  ;;  %950 = vadd.xlane.f32.xlu0 %v949_v7 }
 0x3d5   :  { %2057 = vmatprep.mubr.msk.f32.mxu1 %vm2305_vm1, %v2304_v10  ;;  %2071 = vmatprep.subr.mxu1 %v2304_v10 }
 0x3d7   :  { %2058 = vmatmul.mubr.msk.f32.vlgmr.msra.gmra.mxu1 %vm373_vm2, %v2144_v5 }
 0x3d8   :  { %2072 = vmatpush3.xpose.msk.msra.mxu1 %vm373_vm2, %v2412_v20  ;;  %457 = vadd.xlane.f32.xlu0 %v456_v8 }
 0x3d9   :  { %2073 = vmatprep.mubr.msk.f32.mxu1 %vm2305_vm1, %v2304_v10  ;;  %2076 = vmatprep.subr.mxu1 %v2304_v10 }
 0x3db   :  { %2074 = vmatmul.mubr.msk.f32.vlgmr.msra.gmra.mxu1 %vm373_vm2, %v2410_v19 }
 0x3dc   :  { %2077 = vmatpush3.msra.mxu1 %v2437_v32  ;;  %2078 = vmatprep.mubr.msk.f32.mxu1 %vm2305_vm1, %v2304_v10 }
 0x3dd   :  { %2086 = vmatprep.subr.mxu1 %v2304_v10 }
 0x3f5   :  { %v786_v11 = vpop.xlane.xlu1 %785 }
 0x459   :  { %v620_v9 = vpop.xlane.xlu0 %619 }
 0x45a   :  { %2145 = vrcp.f32 %v620_v9 }
 0x45b   :  { %2147 = vrcp.f32 %v786_v11 }
 0x45d   :  { %v951_v13 = vpop.xlane.xlu0 %950 }
 0x45e   :  { %2149 = vrcp.f32 %v951_v13 }
 0x461   :  { %v458_v35 = vpop.xlane.xlu0 %457 }
 0x462   :  { %2151 = vrcp.f32 %v458_v35 }
 0x467   :  { %v2146_v17 = vpop.eup %2145 }
 0x468   :  { %v2148_v23 = vpop.eup %2147 }
 0x46b   :  { %v2150_v27 = vpop.eup %2149 }
 0x46f   :  { %v2152_v36 = vpop.eup %2151 }
 0x470   :  { %v533_v38 = vmul.f32 %v2152_v36, %v2454_v51 }
 0x48f   :  { %v695_v18 = vpop.f32.mrf.mxu1 }
 0x490   :  { %v699_v21 = vmul.f32 %v2146_v17, %v695_v18 }
 0x491   :  { %v2039_v22 = vpop.f32.mrf.mxu1 }
 0x492   :  { %1031 = vrot.lane.b32.xlu1 %v699_v21, %s2300_s15 }
 0x493   :  { %v860_v24 = vpop.f32.mrf.mxu1 }
 0x494   :  { %v864_v25 = vmul.f32 %v2148_v23, %v860_v24 }
 0x495   :  { %v2049_v26 = vpop.f32.mrf.mxu1 }
 0x496   :  { %1035 = vrot.lane.b32.xlu0 %v864_v25, %s2309_s6 }
 0x497   :  { %v1025_v28 = vpop.f32.mrf.mxu1 }
 0x498   :  { %v1029_v29 = vmul.f32 %v2150_v27, %v1025_v28 }
 0x499   :  { %v2059_v30 = vpop.f32.mrf.mxu1 }
 0x49a   :  { %1287 = vrot.lane.b32.xlu0 %v2410_v19, %s2306_s16  ;;  %1039 = vrot.lane.b32.xlu1 %v1029_v29, %s2310_s19 }
 0x49b   :  { %v1199_v31 = vpop.f32.mrf.mxu1 }
 0x49c   :  { %v1203_v34 = vsel %vm373_vm2, %v1199_v31, -inf }
 0x49d   :  { %v2075_v33 = vpop.f32.mrf.mxu1 }
 0x49e   :  { %1453 = vrot.lane.b32.xlu0 %v2410_v19, %s2307_s4  ;;  %1289 = vrot.lane.b32.xlu1 %v2412_v20, %s2306_s16 }
 0x4a2   :  { %1618 = vrot.lane.b32.xlu0 %v2410_v19, %s2308_s5  ;;  %1455 = vrot.lane.b32.xlu1 %v2412_v20, %s2307_s4 }
 0x4a6   :  { %1620 = vrot.lane.b32.xlu1 %v2412_v20, %s2308_s5 }
 0x4ca   :  { %1204 = vmax.xlane.f32.xlu1 %v1203_v34 }
 0x4db   :  { %1541 = vrot.lane.b32.xlu1 %v2437_v32, %s2307_s4 }
 0x504   :  { %v1032_v37 = vpop.permute.xlu1 %1031 }
 0x505   :  { %v1042_v39 = vsel %vm373_vm2, %v533_v38, %v1032_v37 }
 0x508   :  { %v1036_v19 = vpop.permute.xlu0 %1035 }
 0x509   :  { %v1044_v40 = vsel %vm1043_vm3, %v1042_v39, %v1036_v19 }
 0x50c   :  { %v1040_v20 = vpop.permute.xlu1 %1039  ;;  %v1288_v42 = vpop.permute.xlu0 %1287 }
 0x50d   :  { %v1046_v41 = vsel %vm1045_vm4, %v1044_v40, %v1040_v20 }
 0x50e   :  { %2069 = vmatmul.mubr.msk.f32.vlgmr.msra.gmra.mxu0 %vm114_vm0, %v1046_v41 }
 0x50f   :  { %2083 = vmatprep.mubr.msk.f32.mxu0 %vm2305_vm1, %v2304_v10 }
 0x510   :  { %v1290_v43 = vpop.permute.xlu1 %1289  ;;  %v1454_v45 = vpop.permute.xlu0 %1453 }
 0x511   :  { %2082 = vmatpush3.xpose.msk.msra.mxu0 %vm373_vm2, %v1290_v43 }
 0x512   :  { %2091 = vmatprep.subr.mxu0 %v2304_v10 }
 0x514   :  { %2084 = vmatmul.mubr.msk.f32.vlgmr.msra.gmra.mxu0 %vm373_vm2, %v1288_v42  ;;  %v1456_v44 = vpop.permute.xlu1 %1455  ;;  %v1619_v47 = vpop.permute.xlu0 %1618 }
 0x515   :  { %2092 = vmatpush3.xpose.msk.msra.mxu0 %vm373_vm2, %v1456_v44  ;;  %2093 = vmatprep.mubr.msk.f32.mxu0 %vm2305_vm1, %v2304_v10 }
 0x516   :  { %2101 = vmatprep.subr.mxu0 %v2304_v10 }
 0x518   :  { %2094 = vmatmul.mubr.msk.f32.vlgmr.msra.gmra.mxu0 %vm373_vm2, %v1454_v45  ;;  %v1621_v46 = vpop.permute.xlu1 %1620 }
 0x519   :  { %2102 = vmatpush3.xpose.msk.msra.mxu0 %vm373_vm2, %v1621_v46  ;;  %2103 = vmatprep.mubr.msk.f32.mxu0 %vm2305_vm1, %v2304_v10 }
 0x51a   :  { %2111 = vmatprep.subr.mxu0 %v2304_v10 }
 0x51c   :  { %2104 = vmatmul.mubr.msk.f32.vlgmr.msra.gmra.mxu0 %vm373_vm2, %v1619_v47 }
 0x51d   :  { %2112 = vmatpush3.msra.mxu0 %v2483_v12  ;;  %2119 = vmatprep.mubr.msk.f32.mxu0 %vm2305_vm1, %v2304_v10 }
 0x51e   :  { %2113 = vmatprep.subr.mxu0 %v2304_v10 }
 0x51f   :  { %2114 = vmatpush3.msra.mxu0 %v2487_v14 }
 0x520   :  { %2115 = vmatprep.subr.mxu0 %v2304_v10 }
 0x521   :  { %2116 = vmatpush3.msra.mxu0 %v2489_v15 }
 0x522   :  { %2117 = vmatprep.subr.mxu0 %v2304_v10 }
 0x523   :  { %2118 = vmatpush3.msra.mxu0 %v2495_v16 }
 0x553   :  { %v1205_v48 = vpop.xlane.xlu1 %1204 }
 0x554   :  { %v1206_v49 = vsub.f32 %v1199_v31, %v1205_v48 }
 0x556   :  { %v1207_v50 = vmul.f32 1.442695, %v1206_v49 }
 0x557   :  { %v1542_v6 = vpop.permute.xlu1 %1541 }
 0x558   :  { %2153 = vpow2.f32 %v1207_v50 }
 0x565   :  { %v2154_v51 = vpop.eup %2153 }
 0x566   :  { %2079 = vmatmul.mubr.msk.f32.vlgmr.msra.gmra.mxu1 %vm373_vm2, %v2154_v51  ;;  %v1209_v23 = vsel %vm373_vm2, %v2154_v51, 0.0 }
 0x567   :  { %2088 = vmatprep.mubr.msk.f32.mxu1 %vm2305_vm1, %v2304_v10 }
 0x5ce   :  { %v1122_v53 = vpop.f32.mrf.mxu0 }
 0x5cf   :  { %v1123_v54 = vadd.f32 %v2552_v52, %v1122_v53 }
 0x5d0   :  { %v2070_v55 = vpop.f32.mrf.mxu0 }
 0x5d1   :  { %1126 = vst.msk [vmem:[#allocation11] sm:$0xff] %vm114_vm0, %v1123_v54 }
 0x5d4   :  { %v1361_v56 = vpop.f32.mrf.mxu0 }
 0x5d5   :  { %v1365_v57 = vsel %vm373_vm2, %v1361_v56, -inf }
 0x5d6   :  { %1366 = vmax.xlane.f32.xlu0 %v1365_v57  ;;  %v2085_v58 = vpop.f32.mrf.mxu0 }
 0x5d8   :  { %v1527_v59 = vpop.f32.mrf.mxu0 }
 0x5d9   :  { %v1531_v60 = vsel %vm373_vm2, %v1527_v59, -inf }
 0x5da   :  { %1532 = vmax.xlane.f32.xlu0 %v1531_v60  ;;  %v2095_v61 = vpop.f32.mrf.mxu0 }
 0x5dc   :  { %v1692_v62 = vpop.f32.mrf.mxu0 }
 0x5dd   :  { %v1696_v63 = vsel %vm373_vm2, %v1692_v62, -inf }
 0x5de   :  { %v2105_v0 = vpop.f32.mrf.mxu0  ;;  %1697 = vmax.xlane.f32.xlu1 %v1696_v63 }
 0x5ef   :  { %1706 = vrot.lane.b32.xlu1 %v2437_v32, %s2308_s5 }
 0x5f0   :  { %1376 = vrot.lane.b32.xlu0 %v2437_v32, %s2306_s16 }
 0x626   :  { %v2563_v1 = vpop.f32.mrf.mxu1 }
 0x628   :  { %v2080_v2 = vpop.f32.mrf.mxu1 }
 0x65f   :  { %v1367_v3 = vpop.xlane.xlu0 %1366 }
 0x660   :  { %v1368_v4 = vsub.f32 %v1361_v56, %v1367_v3 }
 0x662   :  { %v1369_v5 = vmul.f32 1.442695, %v1368_v4 }
 0x663   :  { %v1533_v7 = vpop.xlane.xlu0 %1532 }
 0x664   :  { %2155 = vpow2.f32 %v1369_v5  ;;  %v1534_v8 = vsub.f32 %v1527_v59, %v1533_v7 }
 0x666   :  { %v1535_v9 = vmul.f32 1.442695, %v1534_v8 }
 0x667   :  { %v1377_v11 = vpop.permute.xlu0 %1376  ;;  %v1698_v12 = vpop.xlane.xlu1 %1697 }
 0x668   :  { %2157 = vpow2.f32 %v1535_v9  ;;  %v1699_v13 = vsub.f32 %v1692_v62, %v1698_v12  ;;  %2087 = vmatpush3.msra.mxu1 %v1377_v11 }
 0x669   :  { %2096 = vmatprep.subr.mxu1 %v2304_v10 }
 0x66a   :  { %v1700_v14 = vmul.f32 1.442695, %v1699_v13 }
 0x66b   :  { %v1707_v17 = vpop.permute.xlu1 %1706 }
 0x66c   :  { %2159 = vpow2.f32 %v1700_v14 }
 0x671   :  { %v2156_v32 = vpop.eup %2155 }
 0x672   :  { %2089 = vmatmul.mubr.msk.f32.vlgmr.msra.gmra.mxu1 %vm373_vm2, %v2156_v32  ;;  %v1371_v15 = vsel %vm373_vm2, %v2156_v32, 0.0 }
 0x673   :  { %2097 = vmatpush3.msra.mxu1 %v1542_v6  ;;  %1372 = vadd.xlane.f32.xlu0 %v1371_v15 }
 0x674   :  { %2098 = vmatprep.mubr.msk.f32.mxu1 %vm2305_vm1, %v2304_v10  ;;  %2106 = vmatprep.subr.mxu1 %v2304_v10 }
 0x675   :  { %v2158_v16 = vpop.eup %2157 }
 0x676   :  { %2099 = vmatmul.mubr.msk.f32.vlgmr.msra.gmra.mxu1 %vm373_vm2, %v2158_v16  ;;  %v1537_v18 = vsel %vm373_vm2, %v2158_v16, 0.0 }
 0x677   :  { %2107 = vmatpush3.msra.mxu1 %v1707_v17  ;;  %1538 = vadd.xlane.f32.xlu1 %v1537_v18 }
 0x678   :  { %2108 = vmatprep.mubr.msk.f32.mxu1 %vm2305_vm1, %v2304_v10 }
 0x679   :  { %v2160_v21 = vpop.eup %2159 }
 0x67a   :  { %2109 = vmatmul.mubr.msk.f32.vlgmr.msra.gmra.mxu1 %vm373_vm2, %v2160_v21  ;;  %v1702_v22 = vsel %vm373_vm2, %v2160_v21, 0.0 }
 0x67b   :  { %1703 = vadd.xlane.f32.xlu0 %v1702_v22 }
 0x67f   :  { %1210 = vadd.xlane.f32.xlu0 %v1209_v23 }
 0x6fc   :  { %v1373_v24 = vpop.xlane.xlu0 %1372 }
 0x6fd   :  { %2161 = vrcp.f32 %v1373_v24 }
 0x700   :  { %v1539_v25 = vpop.xlane.xlu1 %1538 }
 0x701   :  { %2163 = vrcp.f32 %v1539_v25 }
 0x704   :  { %v1704_v26 = vpop.xlane.xlu0 %1703 }
 0x705   :  { %2165 = vrcp.f32 %v1704_v26 }
 0x708   :  { %v1211_v19 = vpop.xlane.xlu0 %1210 }
 0x709   :  { %2167 = vrcp.f32 %v1211_v19 }
 0x70a   :  { %v2162_v27 = vpop.eup %2161 }
 0x70e   :  { %v2164_v10 = vpop.eup %2163 }
 0x712   :  { %v2166_v35 = vpop.eup %2165 }
 0x716   :  { %v2168_v39 = vpop.eup %2167 }
 0x717   :  { %v1286_v20 = vmul.f32 %v2168_v39, %v2563_v1 }
 0x732   :  { %v1448_v28 = vpop.f32.mrf.mxu1 }
 0x733   :  { %v1452_v29 = vmul.f32 %v2162_v27, %v1448_v28 }
 0x734   :  { %v2090_v30 = vpop.f32.mrf.mxu1 }
 0x735   :  { %1784 = vrot.lane.b32.xlu1 %v1452_v29, %s2300_s15 }
 0x736   :  { %v1613_v31 = vpop.f32.mrf.mxu1 }
 0x737   :  { %v1617_v33 = vmul.f32 %v2164_v10, %v1613_v31 }
 0x738   :  { %v2100_v34 = vpop.f32.mrf.mxu1 }
 0x739   :  { %1788 = vrot.lane.b32.xlu0 %v1617_v33, %s2309_s6 }
 0x73a   :  { %v1778_v36 = vpop.f32.mrf.mxu1 }
 0x73b   :  { %v1782_v37 = vmul.f32 %v2166_v35, %v1778_v36 }
 0x73c   :  { %v2110_v38 = vpop.f32.mrf.mxu1 }
 0x73d   :  { %1792 = vrot.lane.b32.xlu1 %v1782_v37, %s2310_s19 }
 0x7a7   :  { %v1785_v40 = vpop.permute.xlu1 %1784 }
 0x7a8   :  { %v1795_v42 = vsel %vm373_vm2, %v1286_v20, %v1785_v40 }
 0x7ab   :  { %v1789_v41 = vpop.permute.xlu0 %1788 }
 0x7ac   :  { %v1796_v43 = vsel %vm1043_vm3, %v1795_v42, %v1789_v41 }
 0x7af   :  { %v1793_v44 = vpop.permute.xlu1 %1792 }
 0x7b0   :  { %v1797_v45 = vsel %vm1045_vm4, %v1796_v43, %v1793_v44 }
 0x7b1   :  { %2120 = vmatmul.mubr.msk.f32.vlgmr.msra.gmra.mxu0 %vm114_vm0, %v1797_v45 }
 0x871   :  { %v1867_v46 = vpop.f32.mrf.mxu0 }
 0x872   :  { %v1868_v47 = vadd.f32 %v2552_v52, %v1867_v46 }
 0x873   :  { %v2121_v48 = vpop.f32.mrf.mxu0 }
 0x874   :  { %1871 = vst.msk [vmem:[#allocation11 + $0x8] sm:$0xff] %vm114_vm0, %v1868_v47 }
 0x875   :  { %2280 = shalt.err (!%p2277_p1)
}
 0x876   :  { %1883 = dma.vmem_to_hbm [thread:$0]  %s1878_s22, 256, %s2603_s9, [#allocation4], %s2299_s14, %s2299_s14, %s2300_s15  }
 0x877   :  { %2295 = dma.done.wait [#allocation4], 256  }
 0x878   :  { %2296 = vsyncadd [#allocation4], 4294967040 }
 0x879   :  { %1887 = vsyncpa [#allocation3], 1 }
 0x87a   :  { %1888 = vsyncpa [#allocation6], 1 }
 0x87b   :  { %1889 = vsyncpa [#allocation9], 1 }
 0x87c   :  { %1890 = vsyncpa [#allocation4], 1 }

</bundles_post_ra>
